<compile_context>
chip_gen: v7x
topology: tpu7x:2x2x1
jax: 0.10.0
libtpu: 0.0.40
codegen_flags: <defaults>
</compile_context>

<pallas_src>
import jax
import jax.numpy as jnp
from jax.experimental import pallas as pl
from jax.experimental.pallas import tpu as pltpu


def vae_forward_kernel(x_ref, eps_ref,
                       we1_ref, be1_ref,
                       we2_ref, be2_ref,
                       wd1_ref, bd1_ref,
                       wd2_ref, bd2_ref,
                       out_ref):
    """Fused VAE forward on one batch tile.

    Matmul operands are bf16 (MXU fast path, f32 accumulation via
    preferred_element_type); biases and all elementwise math are f32.
    """
    x = x_ref[...].astype(jnp.bfloat16)                    # cast in-kernel (x arrives f32)

    # ----- encoder layer 1: Linear + ReLU -----
    h = jnp.dot(x, we1_ref[...], preferred_element_type=jnp.float32) + be1_ref[...]
    h = jnp.maximum(h, 0.0).astype(jnp.bfloat16)

    # ----- encoder layer 2: single (HID, 2Z) matmul, split result into mu / log_sig -----
    z = jnp.dot(h, we2_ref[...], preferred_element_type=jnp.float32) + be2_ref[...]
    zdim = eps_ref.shape[-1]
    mu = z[:, :zdim]
    log_sig = z[:, zdim:]

    # ----- sample_latent (reparameterization trick; exp runs on the EUP) -----
    z_sample = mu + jnp.exp(log_sig) * eps_ref[...]        # f32

    # ----- decoder (IsotropicGaussian wrapper returns the decoder mean) -----
    hd = jnp.dot(z_sample.astype(jnp.bfloat16), wd1_ref[...],
                 preferred_element_type=jnp.float32) + bd1_ref[...]
    hd = jnp.maximum(hd, 0.0)
    recon = jnp.dot(hd.astype(jnp.bfloat16), wd2_ref[...],
                    preferred_element_type=jnp.float32) + bd2_ref[...]

    out_ref[...] = recon.astype(out_ref.dtype)


def _round_up(a, m):
    return ((a + m - 1) // m) * m


def vae_forward(x_nchw, eps, params, *, tile_n=None):
    """Flatten NCHW -> (N, D) (free reshape), run batch-tiled fused kernel, no padding."""
    N, C, H, W = x_nchw.shape
    D = C * H * W
    (we1, be1, we2, be2, wd1, bd1, wd2, bd2) = params
    HID = we1.shape[1]
    Z = wd1.shape[0]
    assert we2.shape[1] == 2 * Z

    # Adaptive batch tile: 16-row granularity (bf16 sublane packing), capped at 256.
    # Prefer >= 2 grid steps once the batch allows it (megacore sharding on v7x).
    if tile_n is None:
        tile_n = min(256, _round_up(N, 16))
        if N > 16 and pl.cdiv(N, tile_n) == 1:
            tile_n = max(16, _round_up(pl.cdiv(N, 2), 16))
    n_tiles = pl.cdiv(N, tile_n)

    # Contiguous NCHW -> (N, D): metadata-only reshape, keep f32 (cast to bf16 in-kernel).
    x_flat = x_nchw.reshape(N, D)

    bf = lambda a: a.astype(jnp.bfloat16)
    f32 = lambda a: a.astype(jnp.float32)

    def row_spec(cols):
        return pl.BlockSpec((tile_n, cols), lambda i: (i, 0))

    def resident(shape):
        # Constant index_map: block fetched once, stays VMEM-resident; single-buffer it.
        return pl.BlockSpec(shape, lambda i: (0, 0), pipeline_mode=pl.Buffered(1))

    flops = 2 * N * (D * HID + HID * 2 * Z + Z * HID + HID * D)
    bytes_accessed = (
        2 * (D * HID + 2 * HID * Z + Z * HID + HID * D)     # bf16 weights (fetched once)
        + 4 * (HID + 2 * Z + HID + D)                        # f32 biases
        + N * (4 * D + 4 * Z + 2 * D))                       # x f32 in, eps f32 in, out bf16

    recon_flat = pl.pallas_call(
        vae_forward_kernel,
        out_shape=jax.ShapeDtypeStruct((N, D), jnp.bfloat16),
        grid_spec=pltpu.PrefetchScalarGridSpec(
            num_scalar_prefetch=0,
            grid=(n_tiles,),
            in_specs=[
                row_spec(D),                 # x tile (f32)
                row_spec(Z),                 # eps tile (f32)
                resident((D, HID)),          # we1 (bf16)
                resident((1, HID)),          # be1
                resident((HID, 2 * Z)),      # we2 = [mu | log_sig] head (bf16)
                resident((1, 2 * Z)),        # be2
                resident((Z, HID)),          # wd1 (bf16)
                resident((1, HID)),          # bd1
                resident((HID, D)),          # wd2 (bf16)
                resident((1, D)),            # bd2
            ],
            out_specs=pl.BlockSpec((tile_n, D), lambda i: (i, 0)),
        ),
        compiler_params=pltpu.CompilerParams(
            dimension_semantics=("parallel",),
            vmem_limit_bytes=48 << 20,
        ),
        cost_estimate=pl.CostEstimate(
            flops=flops, transcendentals=N * Z, bytes_accessed=bytes_accessed),
    )(f32(x_flat), f32(eps),
      bf(we1), f32(be1),
      bf(we2), f32(be2),
      bf(wd1), f32(bd1),
      bf(wd2), f32(bd2))

    return recon_flat.astype(jnp.float32).reshape(N, C, H, W)


def vae_forward_ref(x_nchw, eps, params):
    """Pure-JAX reference with the same bf16-operand / f32-accumulate numerics."""
    N, C, H, W = x_nchw.shape
    D = C * H * W
    (we1, be1, we2, be2, wd1, bd1, wd2, bd2) = params
    bf = lambda a: a.astype(jnp.bfloat16)

    x = bf(x_nchw.reshape(N, D))
    h = jnp.maximum(jnp.dot(x, bf(we1), preferred_element_type=jnp.float32) + be1, 0.0)
    z = jnp.dot(bf(h), bf(we2), preferred_element_type=jnp.float32) + be2
    zdim = z.shape[1] // 2
    mu, log_sig = z[:, :zdim], z[:, zdim:]
    z_sample = mu + jnp.exp(log_sig) * eps
    hd = jnp.maximum(jnp.dot(bf(z_sample), bf(wd1), preferred_element_type=jnp.float32) + bd1, 0.0)
    recon = jnp.dot(bf(hd), bf(wd2), preferred_element_type=jnp.float32) + bd2
    return recon.reshape(N, C, H, W)


def init_params(key, D, HID, Z):
    """Deterministic small-scale parameter init (synthetic, no checkpoint load)."""
    ks = jax.random.split(key, 4)
    scale = 0.05
    we1 = scale * jax.random.normal(ks[0], (D, HID), jnp.float32)
    be1 = jnp.zeros((1, HID), jnp.float32)
    we2 = scale * jax.random.normal(ks[1], (HID, 2 * Z), jnp.float32)
    be2 = jnp.zeros((1, 2 * Z), jnp.float32)
    wd1 = scale * jax.random.normal(ks[2], (Z, HID), jnp.float32)
    bd1 = jnp.zeros((1, HID), jnp.float32)
    wd2 = scale * jax.random.normal(ks[3], (HID, D), jnp.float32)
    bd2 = jnp.zeros((1, D), jnp.float32)
    return (we1, be1, we2, be2, wd1, bd1, wd2, bd2)


if __name__ == "__main__":
    # Small shapes: batch=8, channels=4, spatial=16x16 -> flattened D=1024,
    # hidden=128, latent Z=64 (encoder outputs 2*Z = 128 channels = [mu|log_sig]).
    N, C, H, W = 8, 4, 16, 16
    D = C * H * W
    HID, Z = 128, 64

    key = jax.random.PRNGKey(0)
    kx, keps, kp = jax.random.split(key, 3)

    x = jax.random.uniform(kx, (N, C, H, W), jnp.float32)        # NCHW like PyTorch
    eps = jax.random.normal(keps, (N, Z), jnp.float32)           # reparameterization noise
    params = init_params(kp, D, HID, Z)

    recon = vae_forward(x, eps, params)
    recon = jax.block_until_ready(recon)

    ref = vae_forward_ref(x, eps, params)
    assert recon.shape == (N, C, H, W)
    assert jnp.allclose(recon, ref, atol=2e-2, rtol=2e-2), "mismatch vs pure-JAX reference"

    print("KERNEL_OK")
</pallas_src>

<mosaic_0001>
module attributes {stable_mosaic.version = 11 : i64} {
  func.func @vae_forward_kernel(%arg0: i32, %arg1: memref<16x1024xf32, #tpu.memory_space<vmem>>, %arg2: memref<16x64xf32, #tpu.memory_space<vmem>>, %arg3: memref<1024x128xbf16, #tpu.memory_space<vmem>>, %arg4: memref<1x128xf32, #tpu.memory_space<vmem>>, %arg5: memref<128x128xbf16, #tpu.memory_space<vmem>>, %arg6: memref<1x128xf32, #tpu.memory_space<vmem>>, %arg7: memref<64x128xbf16, #tpu.memory_space<vmem>>, %arg8: memref<1x128xf32, #tpu.memory_space<vmem>>, %arg9: memref<128x1024xbf16, #tpu.memory_space<vmem>>, %arg10: memref<1x1024xf32, #tpu.memory_space<vmem>>, %arg11: memref<16x1024xbf16, #tpu.memory_space<vmem>>) attributes {dimension_semantics = [#tpu.dimension_semantics<parallel>], iteration_bounds = array<i64: 1>, scalar_prefetch = 0 : i64, scratch_operands = 0 : i64, tpu.core_type = #tpu.core_type<tc>, window_params = [{transform_indices = @transform_0, window_bounds = array<i64: 16, 1024>}, {transform_indices = @transform_1, window_bounds = array<i64: 16, 64>}, {pipeline_mode = #tpu.pipeline_mode<synchronous>, transform_indices = @transform_2, window_bounds = array<i64: 1024, 128>}, {pipeline_mode = #tpu.pipeline_mode<synchronous>, transform_indices = @transform_3, window_bounds = array<i64: 1, 128>}, {pipeline_mode = #tpu.pipeline_mode<synchronous>, transform_indices = @transform_4, window_bounds = array<i64: 128, 128>}, {pipeline_mode = #tpu.pipeline_mode<synchronous>, transform_indices = @transform_5, window_bounds = array<i64: 1, 128>}, {pipeline_mode = #tpu.pipeline_mode<synchronous>, transform_indices = @transform_6, window_bounds = array<i64: 64, 128>}, {pipeline_mode = #tpu.pipeline_mode<synchronous>, transform_indices = @transform_7, window_bounds = array<i64: 1, 128>}, {pipeline_mode = #tpu.pipeline_mode<synchronous>, transform_indices = @transform_8, window_bounds = array<i64: 128, 1024>}, {pipeline_mode = #tpu.pipeline_mode<synchronous>, transform_indices = @transform_9, window_bounds = array<i64: 1, 1024>}, {transform_indices = @transform_10, window_bounds = array<i64: 16, 1024>}]} {
    %c0 = arith.constant 0 : index
    %c0_0 = arith.constant 0 : index
    %0 = vector.load %arg1[%c0, %c0_0] : memref<16x1024xf32, #tpu.memory_space<vmem>>, vector<16x1024xf32>
    %1 = arith.truncf %0 : vector<16x1024xf32> to vector<16x1024xbf16>
    %c0_1 = arith.constant 0 : index
    %c0_2 = arith.constant 0 : index
    %2 = vector.load %arg3[%c0_1, %c0_2] : memref<1024x128xbf16, #tpu.memory_space<vmem>>, vector<1024x128xbf16>
    %cst = arith.constant dense<0.000000e+00> : vector<16x128xf32>
    %3 = tpu.matmul %1, %2, %cst {dimension_numbers = #tpu.dot_dimension_numbers<[1], [0], [0], [1], [0, 0, 1, 1], [], []>} : vector<16x1024xbf16>, vector<1024x128xbf16>, vector<16x128xf32> -> vector<16x128xf32>
    %c0_3 = arith.constant 0 : index
    %c0_4 = arith.constant 0 : index
    %4 = vector.load %arg4[%c0_3, %c0_4] : memref<1x128xf32, #tpu.memory_space<vmem>>, vector<1x128xf32>
    %5 = vector.broadcast %4 : vector<1x128xf32> to vector<16x128xf32>
    %6 = arith.addf %3, %5 : vector<16x128xf32>
    %cst_5 = arith.constant 0.000000e+00 : f32
    %7 = vector.broadcast %cst_5 : f32 to vector<16x128xf32>
    %8 = arith.maximumf %6, %7 : vector<16x128xf32>
    %9 = arith.truncf %8 : vector<16x128xf32> to vector<16x128xbf16>
    %c0_6 = arith.constant 0 : index
    %c0_7 = arith.constant 0 : index
    %10 = vector.load %arg5[%c0_6, %c0_7] : memref<128x128xbf16, #tpu.memory_space<vmem>>, vector<128x128xbf16>
    %cst_8 = arith.constant dense<0.000000e+00> : vector<16x128xf32>
    %11 = tpu.matmul %9, %10, %cst_8 {dimension_numbers = #tpu.dot_dimension_numbers<[1], [0], [0], [1], [0, 0, 1, 1], [], []>} : vector<16x128xbf16>, vector<128x128xbf16>, vector<16x128xf32> -> vector<16x128xf32>
    %c0_9 = arith.constant 0 : index
    %c0_10 = arith.constant 0 : index
    %12 = vector.load %arg6[%c0_9, %c0_10] : memref<1x128xf32, #tpu.memory_space<vmem>>, vector<1x128xf32>
    %13 = vector.broadcast %12 : vector<1x128xf32> to vector<16x128xf32>
    %14 = arith.addf %11, %13 : vector<16x128xf32>
    %15 = vector.extract_strided_slice %14 {offsets = [0, 0], sizes = [16, 64], strides = [1, 1]} : vector<16x128xf32> to vector<16x64xf32>
    %16 = vector.extract_strided_slice %14 {offsets = [0, 64], sizes = [16, 64], strides = [1, 1]} : vector<16x128xf32> to vector<16x64xf32>
    %17 = math.exp %16 : vector<16x64xf32>
    %c0_11 = arith.constant 0 : index
    %c0_12 = arith.constant 0 : index
    %18 = vector.load %arg2[%c0_11, %c0_12] : memref<16x64xf32, #tpu.memory_space<vmem>>, vector<16x64xf32>
    %19 = arith.mulf %17, %18 : vector<16x64xf32>
    %20 = arith.addf %15, %19 : vector<16x64xf32>
    %21 = arith.truncf %20 : vector<16x64xf32> to vector<16x64xbf16>
    %c0_13 = arith.constant 0 : index
    %c0_14 = arith.constant 0 : index
    %22 = vector.load %arg7[%c0_13, %c0_14] : memref<64x128xbf16, #tpu.memory_space<vmem>>, vector<64x128xbf16>
    %cst_15 = arith.constant dense<0.000000e+00> : vector<16x128xf32>
    %23 = tpu.matmul %21, %22, %cst_15 {dimension_numbers = #tpu.dot_dimension_numbers<[1], [0], [0], [1], [0, 0, 1, 1], [], []>} : vector<16x64xbf16>, vector<64x128xbf16>, vector<16x128xf32> -> vector<16x128xf32>
    %c0_16 = arith.constant 0 : index
    %c0_17 = arith.constant 0 : index
    %24 = vector.load %arg8[%c0_16, %c0_17] : memref<1x128xf32, #tpu.memory_space<vmem>>, vector<1x128xf32>
    %25 = vector.broadcast %24 : vector<1x128xf32> to vector<16x128xf32>
    %26 = arith.addf %23, %25 : vector<16x128xf32>
    %cst_18 = arith.constant 0.000000e+00 : f32
    %27 = vector.broadcast %cst_18 : f32 to vector<16x128xf32>
    %28 = arith.maximumf %26, %27 : vector<16x128xf32>
    %29 = arith.truncf %28 : vector<16x128xf32> to vector<16x128xbf16>
    %c0_19 = arith.constant 0 : index
    %c0_20 = arith.constant 0 : index
    %30 = vector.load %arg9[%c0_19, %c0_20] : memref<128x1024xbf16, #tpu.memory_space<vmem>>, vector<128x1024xbf16>
    %cst_21 = arith.constant dense<0.000000e+00> : vector<16x1024xf32>
    %31 = tpu.matmul %29, %30, %cst_21 {dimension_numbers = #tpu.dot_dimension_numbers<[1], [0], [0], [1], [0, 0, 1, 1], [], []>} : vector<16x128xbf16>, vector<128x1024xbf16>, vector<16x1024xf32> -> vector<16x1024xf32>
    %c0_22 = arith.constant 0 : index
    %c0_23 = arith.constant 0 : index
    %32 = vector.load %arg10[%c0_22, %c0_23] : memref<1x1024xf32, #tpu.memory_space<vmem>>, vector<1x1024xf32>
    %33 = vector.broadcast %32 : vector<1x1024xf32> to vector<16x1024xf32>
    %34 = arith.addf %31, %33 : vector<16x1024xf32>
    %35 = arith.truncf %34 : vector<16x1024xf32> to vector<16x1024xbf16>
    %c0_24 = arith.constant 0 : index
    %c0_25 = arith.constant 0 : index
    %36 = vector.load %arg11[%c0_24, %c0_25] : memref<16x1024xbf16, #tpu.memory_space<vmem>>, vector<16x1024xbf16>
    tpu.vector_store %arg11[%c0_24, %c0_25], %35 {strides = array<i32>} : memref<16x1024xbf16, #tpu.memory_space<vmem>>, vector<16x1024xbf16>,
    return
  }
  func.func @transform_0(%arg0: i32) -> (i32, i32) {
    %c0_i32 = arith.constant 0 : i32
    %c0_i32_0 = arith.constant 0 : i32
    return %arg0, %c0_i32 : i32, i32
  }
  func.func @transform_1(%arg0: i32) -> (i32, i32) {
    %c0_i32 = arith.constant 0 : i32
    %c0_i32_0 = arith.constant 0 : i32
    return %arg0, %c0_i32 : i32, i32
  }
  func.func @transform_2(%arg0: i32) -> (i32, i32) {
    %c0_i32 = arith.constant 0 : i32
    %c0_i32_0 = arith.constant 0 : i32
    %c0_i32_1 = arith.constant 0 : i32
    return %c0_i32, %c0_i32_0 : i32, i32
  }
  func.func @transform_3(%arg0: i32) -> (i32, i32) {
    %c0_i32 = arith.constant 0 : i32
    %c0_i32_0 = arith.constant 0 : i32
    %c0_i32_1 = arith.constant 0 : i32
    return %c0_i32, %c0_i32_0 : i32, i32
  }
  func.func @transform_4(%arg0: i32) -> (i32, i32) {
    %c0_i32 = arith.constant 0 : i32
    %c0_i32_0 = arith.constant 0 : i32
    %c0_i32_1 = arith.constant 0 : i32
    return %c0_i32, %c0_i32_0 : i32, i32
  }
  func.func @transform_5(%arg0: i32) -> (i32, i32) {
    %c0_i32 = arith.constant 0 : i32
    %c0_i32_0 = arith.constant 0 : i32
    %c0_i32_1 = arith.constant 0 : i32
    return %c0_i32, %c0_i32_0 : i32, i32
  }
  func.func @transform_6(%arg0: i32) -> (i32, i32) {
    %c0_i32 = arith.constant 0 : i32
    %c0_i32_0 = arith.constant 0 : i32
    %c0_i32_1 = arith.constant 0 : i32
    return %c0_i32, %c0_i32_0 : i32, i32
  }
  func.func @transform_7(%arg0: i32) -> (i32, i32) {
    %c0_i32 = arith.constant 0 : i32
    %c0_i32_0 = arith.constant 0 : i32
    %c0_i32_1 = arith.constant 0 : i32
    return %c0_i32, %c0_i32_0 : i32, i32
  }
  func.func @transform_8(%arg0: i32) -> (i32, i32) {
    %c0_i32 = arith.constant 0 : i32
    %c0_i32_0 = arith.constant 0 : i32
    %c0_i32_1 = arith.constant 0 : i32
    return %c0_i32, %c0_i32_0 : i32, i32
  }
  func.func @transform_9(%arg0: i32) -> (i32, i32) {
    %c0_i32 = arith.constant 0 : i32
    %c0_i32_0 = arith.constant 0 : i32
    %c0_i32_1 = arith.constant 0 : i32
    return %c0_i32, %c0_i32_0 : i32, i32
  }
  func.func @transform_10(%arg0: i32) -> (i32, i32) {
    %c0_i32 = arith.constant 0 : i32
    %c0_i32_0 = arith.constant 0 : i32
    return %arg0, %c0_i32 : i32, i32
  }
}

</mosaic_0001>

<bundles_post_ra>
// kernel: tpu_custom_call.1
= control target key start
LH: loop header
LB: loop body
LE: loop exit
PB: predicated region body
PF: predicated region fallthrough
CT: control target
= control target key end

     0   :  { %15 = vsyncpa [#allocation3], 0  ;;  %s2514_s0 = inlined_call_operand.hbm [shape: f32[8,1024], index: 0, kind: input, shape index: {}]   ;;  %s2515_s1 = inlined_call_operand.hbm [shape: f32[8,64], index: 1, kind: input, shape index: {}]   ;;  %s2516_s2 = inlined_call_operand.hbm [shape: bf16[1024,128], index: 2, kind: input, shape index: {}]   ;;  %s2517_s3 = inlined_call_operand.vmem [shape: f32[1,128], index: 3, kind: input, shape index: {}]   ;;  %s2518_s4 = inlined_call_operand.hbm [shape: bf16[128,128], index: 4, kind: input, shape index: {}]   ;;  %s2519_s5 = inlined_call_operand.vmem [shape: f32[1,128], index: 5, kind: input, shape index: {}]   ;;  %s2520_s6 = inlined_call_operand.hbm [shape: bf16[64,128], index: 6, kind: input, shape index: {}]   ;;  %s2521_s7 = inlined_call_operand.vmem [shape: f32[1,128], index: 7, kind: input, shape index: {}]   ;;  %s2522_s8 = inlined_call_operand.hbm [shape: bf16[128,1024], index: 8, kind: input, shape index: {}]   ;;  %s2523_s9 = inlined_call_operand.vmem [shape: f32[1,1024], index: 9, kind: input, shape index: {}]   ;;  %s2524_s10 = inlined_call_operand.hbm [shape: bf16[8,1024], index: 10, kind: output, shape index: {}]  }
   0x1   :  { %16 = vsyncpa [#allocation6], 0 }
   0x2   :  { %17 = vsyncpa [#allocation9], 0 }
   0x3   :  { %18 = vsyncpa [#allocation12], 0 }
   0x4   :  { %19 = vsyncpa [#allocation4], 0 }
   0x5   :  { %24 = vsyncadd [#allocation3], 1024  ;;  %s2284_s13 = smov [#allocation2]   ;;  %s2120_s17 = scalar_lea.hbm %s2514_s0, 1024 }
   0x6   :  { %s25_s14 = sshll.u32 %s2284_s13, 4  ;;  %p2121_p0 = scmp.ne.s32.totalorder %s2514_s0, %s2120_s17  ;;  %s26_s14 = int_to_ptr.vmem [resolvable:$true] %s25_s14 }
   0x7   :  { %p2124_p1 = scmp.lt.u32.totalorder %s2120_s17, %s2514_s0 }
   0x9   :  { %p2126_p2 = pnand %p2124_p1, %p2121_p0 }
   0xb   :  { %2129 = shalt.err (!%p2126_p2)
}
   0xc   :  { %s2130_s22 = scalar_lea.vmem %s26_s14, 1024  ;;  %s2134_s23 = scalar_lea.vmem %s26_s14, 2048 }
   0xd   :  { %p2131_p3 = scmp.ne.s32.totalorder %s26_s14, %s2130_s22  ;;  %p2135_p4 = scmp.lt.s32.totalorder %s26_s14, %s26_s14 }
   0xe   :  { %p2136_p5 = scmp.lt.s32.totalorder %s2134_s23, %s2130_s22 }
  0x10   :  { %p2137_p6 = por %p2136_p5, %p2135_p4 }
  0x12   :  { %p2138_p7 = pnand %p2137_p6, %p2131_p3 }
  0x14   :  { %2141 = shalt.err (!%p2138_p7)
}
  0x15   :  { %s2285_s24 = smov 1024   ;;  %s2286_s25 = smov 64  }
  0x16   :  { %31 = dma.hbm_to_vmem [thread:$0]  %s2514_s0, 1024, %s26_s14, [#allocation3], %s2285_s24, %s2285_s24, %s2286_s25  }
  0x17   :  { %36 = vsyncadd [#allocation6], 128  ;;  %s2287_s28 = smov [#allocation5]   ;;  %s2142_s12 = scalar_lea.hbm %s2515_s1, 128 }
  0x18   :  { %s37_s29 = sshll.u32 %s2287_s28, 4  ;;  %p2143_p8 = scmp.ne.s32.totalorder %s2515_s1, %s2142_s12  ;;  %s38_s29 = int_to_ptr.vmem [resolvable:$true] %s37_s29 }
  0x19   :  { %p2146_p9 = scmp.lt.u32.totalorder %s2142_s12, %s2515_s1 }
  0x1b   :  { %p2148_p10 = pnand %p2146_p9, %p2143_p8 }
  0x1d   :  { %2151 = shalt.err (!%p2148_p10)
}
  0x1e   :  { %s2152_s18 = scalar_lea.vmem %s38_s29, 128  ;;  %s2156_s0 = scalar_lea.vmem %s38_s29, 256 }
  0x1f   :  { %p2153_p11 = scmp.ne.s32.totalorder %s38_s29, %s2152_s18  ;;  %p2157_p12 = scmp.lt.s32.totalorder %s38_s29, %s38_s29 }
  0x20   :  { %p2158_p13 = scmp.lt.s32.totalorder %s2156_s0, %s2152_s18 }
  0x22   :  { %p2159_p0 = por %p2158_p13, %p2157_p12 }
  0x24   :  { %p2160_p1 = pnand %p2159_p0, %p2153_p11 }
  0x26   :  { %2163 = shalt.err (!%p2160_p1)
}
  0x27   :  { %s2288_s14 = smov 128   ;;  %s2289_s19 = smov 8  }
  0x28   :  { %43 = dma.hbm_to_vmem [thread:$0]  %s2515_s1, 128, %s38_s29, [#allocation6], %s2288_s14, %s2288_s14, %s2289_s19  }
  0x29   :  { %s2290_s22 = smov [#allocation8]   ;;  %s2291_s24 = smov [#allocation7]  }
  0x2a   :  { %s63_s23 = sshll.u32 %s2290_s22, 4  ;;  %s49_s26 = sshll.u32 %s2291_s24, 4  ;;  %s64_s23 = int_to_ptr.vmem [resolvable:$true] %s63_s23  ;;  %s2381_s26 = int_to_ptr.vmem [resolvable:$true] %s49_s26 }
  0x2b   :  { %s2164_s30 = scalar_lea.hbm %s2518_s4, 1024 }
  0x2c   :  { %p2165_p2 = scmp.ne.s32.totalorder %s2518_s4, %s2164_s30  ;;  %p2168_p3 = scmp.lt.u32.totalorder %s2164_s30, %s2518_s4 }
  0x2e   :  { %p2170_p4 = pnand %p2168_p3, %p2165_p2 }
  0x30   :  { %2173 = shalt.err (!%p2170_p4)
}
  0x31   :  { %s2174_s1 = scalar_lea.vmem %s64_s23, 1024  ;;  %p2179_p6 = scmp.lt.s32.totalorder %s64_s23, %s64_s23 }
  0x32   :  { %p2175_p5 = scmp.ne.s32.totalorder %s64_s23, %s2174_s1  ;;  %p2180_p7 = scmp.lt.s32.totalorder %s2174_s1, %s2174_s1 }
  0x34   :  { %p2181_p8 = por %p2180_p7, %p2179_p6 }
  0x36   :  { %p2182_p9 = pnand %p2181_p8, %p2175_p5 }
  0x38   :  { %2185 = shalt.err (!%p2182_p9)
}
  0x39   :  { %s2292_s29 = smov 4   ;;  %s2186_s14 = scalar_lea.hbm %s2516_s2, 8192 }
  0x3a   :  { %69 = dma.hbm_to_vmem [thread:$0]  %s2518_s4, 1024, %s64_s23, [#allocation9], %s2286_s25, %s2286_s25, %s2292_s29  }
  0x3b   :  { %p2187_p10 = scmp.ne.s32.totalorder %s2516_s2, %s2186_s14  ;;  %p2190_p11 = scmp.lt.u32.totalorder %s2186_s14, %s2516_s2 }
  0x3d   :  { %p2192_p12 = pnand %p2190_p11, %p2187_p10 }
  0x3f   :  { %2195 = shalt.err (!%p2192_p12)
}
  0x40   :  { %s2196_s24 = scalar_lea.vmem %s2381_s26, 8192  ;;  %p2201_p0 = scmp.lt.s32.totalorder %s2381_s26, %s2381_s26 }
  0x41   :  { %p2197_p13 = scmp.ne.s32.totalorder %s2381_s26, %s2196_s24  ;;  %p2202_p1 = scmp.lt.s32.totalorder %s2196_s24, %s2196_s24 }
  0x43   :  { %p2203_p2 = por %p2202_p1, %p2201_p0 }
  0x45   :  { %p2204_p3 = pnand %p2203_p2, %p2197_p13 }
  0x47   :  { %2207 = shalt.err (!%p2204_p3)
}
  0x48   :  { %55 = dma.hbm_to_vmem [thread:$0]  %s2516_s2, 8192, %s2381_s26, [#allocation6], %s2286_s25, %s2286_s25, %s2292_s29  }
  0x49   :  { %s2293_s27 = smov [#allocation10]   ;;  %s2294_s30 = smov [#allocation11]  }
  0x4a   :  { %s77_s28 = sshll.u32 %s2293_s27, 4  ;;  %s91_s11 = sshll.u32 %s2294_s30, 4  ;;  %s78_s28 = int_to_ptr.vmem [resolvable:$true] %s77_s28  ;;  %s2418_s11 = int_to_ptr.vmem [resolvable:$true] %s91_s11 }
  0x4b   :  { %s2208_s15 = scalar_lea.hbm %s2520_s6, 512 }
  0x4c   :  { %p2209_p4 = scmp.ne.s32.totalorder %s2520_s6, %s2208_s15  ;;  %p2212_p5 = scmp.lt.u32.totalorder %s2208_s15, %s2520_s6 }
  0x4e   :  { %p2214_p6 = pnand %p2212_p5, %p2209_p4 }
  0x50   :  { %2217 = shalt.err (!%p2214_p6)
}
  0x51   :  { %s2218_s2 = scalar_lea.vmem %s78_s28, 512  ;;  %p2223_p8 = scmp.lt.s32.totalorder %s78_s28, %s78_s28 }
  0x52   :  { %p2219_p7 = scmp.ne.s32.totalorder %s78_s28, %s2218_s2  ;;  %p2224_p9 = scmp.lt.s32.totalorder %s2218_s2, %s2218_s2 }
  0x54   :  { %p2225_p10 = por %p2224_p9, %p2223_p8 }
  0x56   :  { %p2226_p11 = pnand %p2225_p10, %p2219_p7 }
  0x58   :  { %2229 = shalt.err (!%p2226_p11)
}
  0x59   :  { %83 = dma.hbm_to_vmem [thread:$0]  %s2520_s6, 512, %s78_s28, [#allocation9], %s2286_s25, %s2286_s25, %s2292_s29  }
  0x5a   :  { %s2230_s20 = scalar_lea.hbm %s2522_s8, 8192 }
  0x5b   :  { %p2231_p12 = scmp.ne.s32.totalorder %s2522_s8, %s2230_s20  ;;  %p2234_p13 = scmp.lt.u32.totalorder %s2230_s20, %s2522_s8 }
  0x5d   :  { %p2236_p0 = pnand %p2234_p13, %p2231_p12 }
  0x5f   :  { %2239 = shalt.err (!%p2236_p0)
}
  0x60   :  { %s2240_s23 = scalar_lea.vmem %s2418_s11, 8192  ;;  %p2245_p2 = scmp.lt.s32.totalorder %s2418_s11, %s2418_s11 }
  0x61   :  { %p2241_p1 = scmp.ne.s32.totalorder %s2418_s11, %s2240_s23  ;;  %p2246_p3 = scmp.lt.s32.totalorder %s2240_s23, %s2240_s23 }
  0x63   :  { %p2247_p4 = por %p2246_p3, %p2245_p2 }
  0x65   :  { %p2248_p5 = pnand %p2247_p4, %p2241_p1 }
  0x67   :  { %2251 = shalt.err (!%p2248_p5)
}
  0x68   :  { %s2295_s6 = smov 512   ;;  %s2296_s29 = smov 32  }
  0x69   :  { %97 = dma.hbm_to_vmem [thread:$0]  %s2522_s8, 8192, %s2418_s11, [#allocation12], %s2295_s6, %s2295_s6, %s2296_s29  }
  0x6a   :  { %2274 = dma.done.wait [#allocation3], 2048  }
  0x6b   :  { %2275 = vsyncadd [#allocation3], 4294965248 }
  0x6c   :  { %2276 = dma.done.wait [#allocation6], 8448  }
  0x6d   :  { %2277 = vsyncadd [#allocation6], 4294958848 }
  0x6e   :  { %2278 = dma.done.wait [#allocation9], 1536  }
  0x6f   :  { %2279 = vsyncadd [#allocation9], 4294965760 }
  0x70   :  { %2280 = dma.done.wait [#allocation12], 8192  }
  0x71   :  { %2281 = vsyncadd [#allocation12], 4294959104  ;;  %v2040_v0 = vld [vmem:[#allocation7 + $0x40] sm:$0xff]   ;;  %v2044_v4 = vld [vmem:[#allocation7 + $0x48] sm:$0xff]   ;;  %vm2298_vm0 = vmmov 0   ;;  %vm1007_vm1 = vcmask 523264  }
  0x72   :  { %v2041_v1 = vld [vmem:[#allocation7 + $0xc0] sm:$0xff]   ;;  %1889 = vmatprep.subr.bf16.mxu0 %v2040_v0  ;;  %v2045_v5 = vld [vmem:[#allocation7 + $0xc8] sm:$0xff]   ;;  %v2048_v8 = vld [vmem:[#allocation7 + $0x50] sm:$0xff]  }
  0x73   :  { %v2042_v2 = vld [vmem:[#allocation7] sm:$0xff]   ;;  %1911 = vmatprep.subr.bf16.mxu1 %v2041_v1  ;;  %v2046_v6 = vld [vmem:[#allocation7 + $0x8] sm:$0xff]   ;;  %v2049_v9 = vld [vmem:[#allocation7 + $0xd0] sm:$0xff]  }
  0x74   :  { %v2043_v3 = vld [vmem:[#allocation7 + $0x80] sm:$0xff]   ;;  %1890 = vmatpush3.bf16.msra.mxu0 %v2042_v2  ;;  %v2047_v7 = vld [vmem:[#allocation7 + $0x88] sm:$0xff]   ;;  %v2050_v10 = vld [vmem:[#allocation7 + $0x10] sm:$0xff]  }
  0x75   :  { %1912 = vmatpush3.bf16.msra.mxu1 %v2043_v3  ;;  %1891 = vmatprep.subr.bf16.mxu0 %v2044_v4  ;;  %v2051_v11 = vld [vmem:[#allocation7 + $0x90] sm:$0xff]   ;;  %v2052_v12 = vld [vmem:[#allocation7 + $0x58] sm:$0xff]   ;;  %v2056_v16 = vld [vmem:[#allocation7 + $0x60] sm:$0xff]  }
  0x76   :  { %1913 = vmatprep.subr.bf16.mxu1 %v2045_v5  ;;  %v2053_v13 = vld [vmem:[#allocation7 + $0xd8] sm:$0xff]   ;;  %v2057_v17 = vld [vmem:[#allocation7 + $0xe0] sm:$0xff]   ;;  %v2060_v20 = vld [vmem:[#allocation7 + $0x68] sm:$0xff]  }
  0x77   :  { %v2054_v14 = vld [vmem:[#allocation7 + $0x18] sm:$0xff]   ;;  %v2058_v18 = vld [vmem:[#allocation7 + $0x20] sm:$0xff]   ;;  %v2061_v21 = vld [vmem:[#allocation7 + $0xe8] sm:$0xff]  }
  0x78   :  { %1892 = vmatpush3.bf16.msra.mxu0 %v2046_v6  ;;  %v2055_v15 = vld [vmem:[#allocation7 + $0x98] sm:$0xff]   ;;  %v2059_v19 = vld [vmem:[#allocation7 + $0xa0] sm:$0xff]   ;;  %v2062_v22 = vld [vmem:[#allocation7 + $0x28] sm:$0xff]  }
  0x79   :  { %1914 = vmatpush3.bf16.msra.mxu1 %v2047_v7  ;;  %1893 = vmatprep.subr.bf16.mxu0 %v2048_v8  ;;  %v2063_v23 = vld [vmem:[#allocation7 + $0xa8] sm:$0xff]   ;;  %v2064_v24 = vld [vmem:[#allocation7 + $0x70] sm:$0xff]   ;;  %v2068_v28 = vld [vmem:[#allocation7 + $0x78] sm:$0xff]  }
  0x7a   :  { %1915 = vmatprep.subr.bf16.mxu1 %v2049_v9  ;;  %v2065_v25 = vld [vmem:[#allocation7 + $0xf0] sm:$0xff]   ;;  %v2069_v29 = vld [vmem:[#allocation7 + $0xf8] sm:$0xff]   ;;  %v122_v34 = vld [vmem:[#allocation2 + $0x18] sm:$0xff] }
  0x7b   :  { %v2066_v26 = vld [vmem:[#allocation7 + $0x30] sm:$0xff]   ;;  %v2070_v30 = vld [vmem:[#allocation7 + $0x38] sm:$0xff]   ;;  %v130_v36 = vld [vmem:[#allocation2 + $0x58] sm:$0xff] }
  0x7c   :  { %1894 = vmatpush3.bf16.msra.mxu0 %v2050_v10  ;;  %v2067_v27 = vld [vmem:[#allocation7 + $0xb0] sm:$0xff]   ;;  %v2071_v31 = vld [vmem:[#allocation7 + $0xb8] sm:$0xff]   ;;  %v138_v39 = vpack.c.bf16 %v130_v36, %v122_v34  ;;  %v121_v41 = vld [vmem:[#allocation2 + $0x10] sm:$0xff] }
  0x7d   :  { %1916 = vmatpush3.bf16.msra.mxu1 %v2051_v11  ;;  %1895 = vmatprep.subr.bf16.mxu0 %v2052_v12  ;;  %v120_v32 = vld [vmem:[#allocation2 + $0x8] sm:$0xff]  ;;  %v119_v37 = vld [vmem:[#allocation2] sm:$0xff]  ;;  %v129_v42 = vld [vmem:[#allocation2 + $0x50] sm:$0xff] }
  0x7e   :  { %1917 = vmatprep.subr.bf16.mxu1 %v2053_v13  ;;  %v128_v33 = vld [vmem:[#allocation2 + $0x48] sm:$0xff]  ;;  %v127_v38 = vld [vmem:[#allocation2 + $0x40] sm:$0xff]  ;;  %v137_v43 = vpack.c.bf16 %v129_v42, %v121_v41  ;;  %v2072_v44 = vld [vmem:[#allocation7 + $0x140] sm:$0xff]   ;;  %735 = vmatprep.mubr.bf16.mxu1 %v138_v39 }
  0x7f   :  { %v136_v35 = vpack.c.bf16 %v128_v33, %v120_v32  ;;  %v135_v40 = vpack.c.bf16 %v127_v38, %v119_v37  ;;  %v2073_v45 = vld [vmem:[#allocation7 + $0x1c0] sm:$0xff]   ;;  %v2076_v48 = vld [vmem:[#allocation7 + $0x148] sm:$0xff]   ;;  %v2080_v52 = vld [vmem:[#allocation7 + $0x150] sm:$0xff]  }
  0x80   :  { %1896 = vmatpush3.bf16.msra.mxu0 %v2054_v14  ;;  %v2074_v46 = vld [vmem:[#allocation7 + $0x100] sm:$0xff]   ;;  %v2077_v49 = vld [vmem:[#allocation7 + $0x1c8] sm:$0xff]   ;;  %v2081_v53 = vld [vmem:[#allocation7 + $0x1d0] sm:$0xff]  }
  0x81   :  { %1918 = vmatpush3.bf16.msra.mxu1 %v2055_v15  ;;  %1897 = vmatprep.subr.bf16.mxu0 %v2056_v16  ;;  %v2075_v47 = vld [vmem:[#allocation7 + $0x180] sm:$0xff]   ;;  %v2078_v50 = vld [vmem:[#allocation7 + $0x108] sm:$0xff]   ;;  %v2082_v54 = vld [vmem:[#allocation7 + $0x110] sm:$0xff]  }
  0x82   :  { %1919 = vmatprep.subr.bf16.mxu1 %v2057_v17  ;;  %694 = vmatprep.mubr.bf16.mxu0 %v136_v35  ;;  %v2079_v51 = vld [vmem:[#allocation7 + $0x188] sm:$0xff]   ;;  %v2083_v55 = vld [vmem:[#allocation7 + $0x190] sm:$0xff]   ;;  %v2084_v56 = vld [vmem:[#allocation7 + $0x158] sm:$0xff]  }
  0x83   :  { %v2085_v57 = vld [vmem:[#allocation7 + $0x1d8] sm:$0xff]   ;;  %v2088_v60 = vld [vmem:[#allocation7 + $0x160] sm:$0xff]   ;;  %v2092_v0 = vld [vmem:[#allocation7 + $0x168] sm:$0xff]  }
  0x84   :  { %1898 = vmatpush3.bf16.msra.mxu0 %v2058_v18  ;;  %v2086_v58 = vld [vmem:[#allocation7 + $0x118] sm:$0xff]   ;;  %v2089_v61 = vld [vmem:[#allocation7 + $0x1e0] sm:$0xff]   ;;  %v2093_v1 = vld [vmem:[#allocation7 + $0x1e8] sm:$0xff]  }
  0x85   :  { %1920 = vmatpush3.bf16.msra.mxu1 %v2059_v19  ;;  %1899 = vmatprep.subr.bf16.mxu0 %v2060_v20  ;;  %v2087_v59 = vld [vmem:[#allocation7 + $0x198] sm:$0xff]   ;;  %v2090_v62 = vld [vmem:[#allocation7 + $0x120] sm:$0xff]   ;;  %v2094_v2 = vld [vmem:[#allocation7 + $0x128] sm:$0xff]  }
  0x86   :  { %1921 = vmatprep.subr.bf16.mxu1 %v2061_v21  ;;  %v2091_v63 = vld [vmem:[#allocation7 + $0x1a0] sm:$0xff]   ;;  %v2095_v3 = vld [vmem:[#allocation7 + $0x1a8] sm:$0xff]   ;;  %v2096_v4 = vld [vmem:[#allocation7 + $0x170] sm:$0xff]  }
  0x87   :  { %v2097_v5 = vld [vmem:[#allocation7 + $0x1f0] sm:$0xff]   ;;  %v2100_v8 = vld [vmem:[#allocation7 + $0x178] sm:$0xff]   ;;  %v126_v14 = vld [vmem:[#allocation2 + $0x38] sm:$0xff] }
  0x88   :  { %1900 = vmatpush3.bf16.msra.mxu0 %v2062_v22  ;;  %v2098_v6 = vld [vmem:[#allocation7 + $0x130] sm:$0xff]   ;;  %v2101_v9 = vld [vmem:[#allocation7 + $0x1f8] sm:$0xff]   ;;  %v134_v15 = vld [vmem:[#allocation2 + $0x78] sm:$0xff] }
  0x89   :  { %1922 = vmatpush3.bf16.msra.mxu1 %v2063_v23  ;;  %1901 = vmatprep.subr.bf16.mxu0 %v2064_v24  ;;  %v2099_v7 = vld [vmem:[#allocation7 + $0x1b0] sm:$0xff]   ;;  %v2102_v10 = vld [vmem:[#allocation7 + $0x138] sm:$0xff]   ;;  %v142_v17 = vpack.c.bf16 %v134_v15, %v126_v14  ;;  %v125_v20 = vld [vmem:[#allocation2 + $0x30] sm:$0xff] }
  0x8a   :  { %1923 = vmatprep.subr.bf16.mxu1 %v2065_v25  ;;  %v2103_v11 = vld [vmem:[#allocation7 + $0x1b8] sm:$0xff]   ;;  %v123_v18 = vld [vmem:[#allocation2 + $0x20] sm:$0xff]  ;;  %v133_v22 = vld [vmem:[#allocation2 + $0x70] sm:$0xff]  ;;  %v2297_v25 = vmov 0.0  }
  0x8b   :  { %v124_v12 = vld [vmem:[#allocation2 + $0x28] sm:$0xff]  ;;  %v131_v19 = vld [vmem:[#allocation2 + $0x60] sm:$0xff]  ;;  %v141_v23 = vpack.c.bf16 %v133_v22, %v125_v20  ;;  %v2104_v24 = vld [vmem:[#allocation8] sm:$0xff]  }
  0x8c   :  { %1902 = vmatpush3.bf16.msra.mxu0 %v2066_v26  ;;  %v132_v13 = vld [vmem:[#allocation2 + $0x68] sm:$0xff]  ;;  %v139_v21 = vpack.c.bf16 %v131_v19, %v123_v18  ;;  %v2105_v26 = vld [vmem:[#allocation8 + $0x8] sm:$0xff]   ;;  %v945_v33 = vld [vmem:[#allocation5] sm:$0xff] }
  0x8d   :  { %1924 = vmatpush3.bf16.msra.mxu1 %v2067_v27  ;;  %1903 = vmatprep.subr.bf16.mxu0 %v2068_v28  ;;  %v140_v16 = vpack.c.bf16 %v132_v13, %v124_v12  ;;  %v2106_v27 = vld [vmem:[#allocation8 + $0x10] sm:$0xff]   ;;  %v2107_v28 = vld [vmem:[#allocation8 + $0x18] sm:$0xff]   ;;  %v1059_v22 = vld [vmem:[#allocation11 + $0x20] sm:$0xff] }
  0x8e   :  { %1925 = vmatprep.subr.bf16.mxu1 %v2069_v29  ;;  %v2108_v29 = vld [vmem:[#allocation8 + $0x20] sm:$0xff]   ;;  %v2111_v32 = vld [vmem:[#allocation8 + $0x38] sm:$0xff]   ;;  %949 = vrot.lane.b32.xlu0 %v945_v33, %s2286_s25  ;;  %v1729_v37 = vld [vmem:[%s2517_s3] ss:$0 sm:$0xff] }
  0x8f   :  { %v946_v34 = vld [vmem:[#allocation5 + $0x8] sm:$0xff]  ;;  %v2114_v18 = vld [vmem:[#allocation10 + $0x10] sm:$0xff]  }
  0x90   :  { %1904 = vmatpush3.bf16.msra.mxu0 %v2070_v30  ;;  %v2109_v30 = vld [vmem:[#allocation8 + $0x28] sm:$0xff]   ;;  %v2115_v19 = vld [vmem:[#allocation10 + $0x18] sm:$0xff]  }
  0x91   :  { %1926 = vmatpush3.bf16.msra.mxu1 %v2071_v31  ;;  %1933 = vmatprep.subr.bf16.mxu0 %v2072_v44  ;;  %v2110_v31 = vld [vmem:[#allocation8 + $0x30] sm:$0xff]  }
  0x92   :  { %1955 = vmatprep.subr.bf16.mxu1 %v2073_v45  ;;  %951 = vrot.lane.b32.xlu0 %v946_v34, %s2286_s25 }
  0x93   :  { %695 = vmatmul.mubr.bf16.vlgmr.msra.gmra.mrb[0].mxu0 %v135_v40 }
  0x94   :  { %736 = vmatmul.mubr.bf16.vlgmr.msra.gmra.mrb[0].mxu1 %v137_v43  ;;  %1934 = vmatpush3.bf16.msra.mxu0 %v2074_v46 }
  0x95   :  { %1956 = vmatpush3.bf16.msra.mxu1 %v2075_v47  ;;  %1935 = vmatprep.subr.bf16.mxu0 %v2076_v48 }
  0x96   :  { %1957 = vmatprep.subr.bf16.mxu1 %v2077_v49  ;;  %776 = vmatprep.mubr.bf16.mxu0 %v140_v16 }
  0x97   :  { %817 = vmatprep.mubr.bf16.mxu1 %v142_v17 }
  0x98   :  { %1936 = vmatpush3.bf16.msra.mxu0 %v2078_v50 }
  0x99   :  { %1958 = vmatpush3.bf16.msra.mxu1 %v2079_v51  ;;  %1937 = vmatprep.subr.bf16.mxu0 %v2080_v52 }
  0x9a   :  { %1959 = vmatprep.subr.bf16.mxu1 %v2081_v53 }
  0x9c   :  { %1938 = vmatpush3.bf16.msra.mxu0 %v2082_v54 }
  0x9d   :  { %1960 = vmatpush3.bf16.msra.mxu1 %v2083_v55  ;;  %1939 = vmatprep.subr.bf16.mxu0 %v2084_v56 }
  0x9e   :  { %1961 = vmatprep.subr.bf16.mxu1 %v2085_v57 }
  0xa0   :  { %1940 = vmatpush3.bf16.msra.mxu0 %v2086_v58 }
  0xa1   :  { %1962 = vmatpush3.bf16.msra.mxu1 %v2087_v59  ;;  %1941 = vmatprep.subr.bf16.mxu0 %v2088_v60 }
  0xa2   :  { %1963 = vmatprep.subr.bf16.mxu1 %v2089_v61 }
  0xa4   :  { %1942 = vmatpush3.bf16.msra.mxu0 %v2090_v62 }
  0xa5   :  { %1964 = vmatpush3.bf16.msra.mxu1 %v2091_v63  ;;  %1943 = vmatprep.subr.bf16.mxu0 %v2092_v0 }
  0xa6   :  { %1965 = vmatprep.subr.bf16.mxu1 %v2093_v1 }
  0xa8   :  { %1944 = vmatpush3.bf16.msra.mxu0 %v2094_v2 }
  0xa9   :  { %1966 = vmatpush3.bf16.msra.mxu1 %v2095_v3  ;;  %1945 = vmatprep.subr.bf16.mxu0 %v2096_v4 }
  0xaa   :  { %1967 = vmatprep.subr.bf16.mxu1 %v2097_v5 }
  0xac   :  { %1946 = vmatpush3.bf16.msra.mxu0 %v2098_v6 }
  0xad   :  { %1968 = vmatpush3.bf16.msra.mxu1 %v2099_v7  ;;  %1947 = vmatprep.subr.bf16.mxu0 %v2100_v8  ;;  %v2112_v7 = vld [vmem:[#allocation10] sm:$0xff]   ;;  %v2113_v8 = vld [vmem:[#allocation10 + $0x8] sm:$0xff]  }
  0xae   :  { %1969 = vmatprep.subr.bf16.mxu1 %v2101_v9  ;;  %v1794_v9 = vld [vmem:[%s2519_s5] ss:$0 sm:$0xff] }
  0xb0   :  { %1948 = vmatpush3.bf16.msra.mxu0 %v2102_v10 }
  0xb1   :  { %1970 = vmatpush3.bf16.msra.mxu1 %v2103_v11  ;;  %1991 = vmatprep.subr.bf16.mxu0 %v2297_v25 }
  0xb2   :  { %2011 = vmatprep.subr.bf16.mxu1 %v2297_v25 }
  0xb3   :  { %777 = vmatmul.mubr.bf16.vlgmr.msra.gmra.mrb[4].mxu0 %v139_v21  ;;  %v1055_v21 = vld [vmem:[#allocation11] sm:$0xff] }
  0xb4   :  { %818 = vmatmul.mubr.bf16.vlgmr.msra.gmra.mrb[4].mxu1 %v141_v23  ;;  %1992 = vmatpush3.bf16.msra.mxu0 %v2104_v24  ;;  %v1056_v23 = vld [vmem:[#allocation11 + $0x8] sm:$0xff]  ;;  %v1809_v24 = vcombine.low %v1055_v21, %v1059_v22 }
  0xb5   :  { %1993 = vmatprep.subr.bf16.mxu0 %v2297_v25  ;;  %2007 = vmatprep.mubr.msk.bf16.mxu0 %vm2298_vm0, %v2297_v25 }
  0xb6   :  { %2019 = vmatprep.mubr.msk.bf16.mxu1 %vm2298_vm0, %v2297_v25  ;;  %2012 = vmatpush3.bf16.msra.mxu1 %v2112_v7  ;;  %v1091_v7 = vld [vmem:[#allocation11 + $0x120] sm:$0xff] }
  0xb7   :  { %2013 = vmatprep.subr.bf16.mxu1 %v2297_v25 }
  0xb8   :  { %1994 = vmatpush3.bf16.msra.mxu0 %v2105_v26  ;;  %v1810_v26 = vcombine.high %v1055_v21, %v1059_v22 }
  0xb9   :  { %1995 = vmatprep.subr.bf16.mxu0 %v2297_v25 }
  0xba   :  { %2014 = vmatpush3.bf16.msra.mxu1 %v2113_v8 }
  0xbb   :  { %2015 = vmatprep.subr.bf16.mxu1 %v2297_v25 }
  0xbc   :  { %1996 = vmatpush3.bf16.msra.mxu0 %v2106_v27  ;;  %v1060_v27 = vld [vmem:[#allocation11 + $0x28] sm:$0xff] }
  0xbd   :  { %1997 = vmatprep.subr.bf16.mxu0 %v2297_v25 }
  0xbe   :  { %2016 = vmatpush3.bf16.msra.mxu1 %v2114_v18 }
  0xbf   :  { %2017 = vmatprep.subr.bf16.mxu1 %v2297_v25 }
  0xc0   :  { %1998 = vmatpush3.bf16.msra.mxu0 %v2107_v28 }
  0xc1   :  { %1999 = vmatprep.subr.bf16.mxu0 %v2297_v25 }
  0xc2   :  { %2018 = vmatpush3.bf16.msra.mxu1 %v2115_v19  ;;  %v1108_v19 = vld [vmem:[#allocation11 + $0x1a8] sm:$0xff] }
  0xc3   :  { %1481 = vmatprep.subr.bf16.mxu1 %v1810_v26  ;;  %v1112_v26 = vld [vmem:[#allocation11 + $0x1c8] sm:$0xff] }
  0xc4   :  { %2000 = vmatpush3.bf16.msra.mxu0 %v2108_v29  ;;  %v1811_v29 = vcombine.low %v1056_v23, %v1060_v27 }
  0xc5   :  { %2001 = vmatprep.subr.bf16.mxu0 %v2297_v25 }
  0xc8   :  { %2002 = vmatpush3.bf16.msra.mxu0 %v2109_v30  ;;  %v1812_v30 = vcombine.high %v1056_v23, %v1060_v27  ;;  %v1111_v23 = vld [vmem:[#allocation11 + $0x1c0] sm:$0xff] }
  0xc9   :  { %2003 = vmatprep.subr.bf16.mxu0 %v2297_v25 }
  0xcc   :  { %2004 = vmatpush3.bf16.msra.mxu0 %v2110_v31  ;;  %v1064_v31 = vld [vmem:[#allocation11 + $0x48] sm:$0xff] }
  0xcd   :  { %2005 = vmatprep.subr.bf16.mxu0 %v2297_v25 }
  0xd0   :  { %2006 = vmatpush3.bf16.msra.mxu0 %v2111_v32  ;;  %v1068_v32 = vld [vmem:[#allocation11 + $0x68] sm:$0xff] }
  0xd1   :  { %v1820_v34 = vcombine.high %v1064_v31, %v1068_v32  ;;  %1524 = vmatprep.subr.bf16.mxu0 %v1812_v30  ;;  %v1819_v25 = vcombine.low %v1064_v31, %v1068_v32  ;;  %v1057_v32 = vld [vmem:[#allocation11 + $0x10] sm:$0xff] }
 0x100   :  { %v950_v20 = vpop.permute.xlu0 %949 }
 0x166   :  { %v1905_v35 = vpop.f32.mrb[0].mxu0 }
 0x167   :  { %v1927_v36 = vpop.f32.mrb[0].mxu1  ;;  %v1906_v38 = vpop.f32.mrb[1].mxu0 }
 0x168   :  { %v1907_v39 = vadd.f32 %v1906_v38, %v1905_v35  ;;  %v1928_v40 = vpop.f32.mrb[1].mxu1  ;;  %v1908_v41 = vpop.f32.mrb[2].mxu0  ;;  %v1076_v38 = vld [vmem:[#allocation11 + $0xa8] sm:$0xff] }
 0x169   :  { %v1929_v42 = vadd.f32 %v1928_v40, %v1927_v36  ;;  %v1930_v43 = vpop.f32.mrb[2].mxu1  ;;  %v1909_v44 = vpop.f32.mrb[3].mxu0 }
 0x16a   :  { %v697_v45 = vadd.f32 %v1907_v39, %v1729_v37  ;;  %v1910_v46 = vadd.f32 %v1909_v44, %v1908_v41  ;;  %v1931_v47 = vpop.f32.mrb[3].mxu1  ;;  %v952_v36 = vpop.permute.xlu0 %951 }
 0x16b   :  { %v1932_v48 = vadd.f32 %v1931_v47, %v1930_v43  ;;  %v1084_v43 = vld [vmem:[#allocation11 + $0xe8] sm:$0xff] }
 0x16c   :  { %v738_v49 = vadd.f32 %v1929_v42, %v697_v45  ;;  %v700_v50 = vadd.f32 %v1910_v46, %v1729_v37  ;;  %v1072_v37 = vld [vmem:[#allocation11 + $0x88] sm:$0xff] }
 0x16d   :  { %v1828_v40 = vcombine.high %v1072_v37, %v1076_v38  ;;  %v1827_v41 = vcombine.low %v1072_v37, %v1076_v38  ;;  %v1080_v42 = vld [vmem:[#allocation11 + $0xc8] sm:$0xff]  ;;  %v2299_v37 = vmov 0  }
 0x16e   :  { %v741_v51 = vadd.f32 %v1932_v48, %v700_v50  ;;  %v1836_v44 = vcombine.high %v1080_v42, %v1084_v43  ;;  %v1835_v45 = vcombine.low %v1080_v42, %v1084_v43  ;;  %v1088_v46 = vld [vmem:[#allocation11 + $0x108] sm:$0xff] }
 0x16f   :  { %v1092_v47 = vld [vmem:[#allocation11 + $0x128] sm:$0xff] }
 0x170   :  { %v1844_v48 = vcombine.high %v1088_v46, %v1092_v47  ;;  %v1096_v50 = vld [vmem:[#allocation11 + $0x148] sm:$0xff] }
 0x186   :  { %v1949_v52 = vpop.f32.mrb[4].mxu0 }
 0x187   :  { %v1971_v53 = vpop.f32.mrb[4].mxu1  ;;  %v1950_v54 = vpop.f32.mrb[5].mxu0 }
 0x188   :  { %v1951_v55 = vadd.f32 %v1950_v54, %v1949_v52  ;;  %v1972_v56 = vpop.f32.mrb[5].mxu1  ;;  %v1952_v57 = vpop.f32.mrb[6].mxu0 }
 0x189   :  { %v1973_v58 = vadd.f32 %v1972_v56, %v1971_v53  ;;  %v1974_v59 = vpop.f32.mrb[6].mxu1  ;;  %v1953_v60 = vpop.f32.mrb[7].mxu0  ;;  %v1063_v56 = vld [vmem:[#allocation11 + $0x40] sm:$0xff] }
 0x18a   :  { %v779_v61 = vadd.f32 %v1951_v55, %v738_v49  ;;  %v1954_v62 = vadd.f32 %v1953_v60, %v1952_v57  ;;  %v1975_v63 = vpop.f32.mrb[7].mxu1  ;;  %v1843_v49 = vcombine.low %v1088_v46, %v1092_v47  ;;  %v1067_v57 = vld [vmem:[#allocation11 + $0x60] sm:$0xff]  ;;  %v1065_v47 = vld [vmem:[#allocation11 + $0x50] sm:$0xff] }
 0x18b   :  { %v1976_v0 = vadd.f32 %v1975_v63, %v1974_v59  ;;  %v1075_v63 = vld [vmem:[#allocation11 + $0xa0] sm:$0xff] }
 0x18c   :  { %v820_v1 = vadd.f32 %v1973_v58, %v779_v61  ;;  %v782_v2 = vadd.f32 %v1954_v62, %v741_v51  ;;  %v1100_v51 = vld [vmem:[#allocation11 + $0x168] sm:$0xff]  ;;  %v1818_v61 = vcombine.high %v1063_v56, %v1067_v57  ;;  %v1071_v62 = vld [vmem:[#allocation11 + $0x80] sm:$0xff] }
 0x18d   :  { %v1852_v52 = vcombine.high %v1096_v50, %v1100_v51  ;;  %v1851_v53 = vcombine.low %v1096_v50, %v1100_v51  ;;  %v1070_v50 = vld [vmem:[#allocation11 + $0x78] sm:$0xff] }
 0x18e   :  { %v823_v3 = vadd.f32 %v1976_v0, %v782_v2  ;;  %v826_v4 = vmax.f32 %v820_v1, 0.0  ;;  %v1817_v0 = vcombine.low %v1063_v56, %v1067_v57  ;;  %v1826_v1 = vcombine.high %v1071_v62, %v1075_v63  ;;  %v1079_v2 = vld [vmem:[#allocation11 + $0xc0] sm:$0xff]  ;;  %v1073_v56 = vld [vmem:[#allocation11 + $0x90] sm:$0xff] }
 0x18f   :  { %v1077_v57 = vld [vmem:[#allocation11 + $0xb0] sm:$0xff] }
 0x190   :  { %v827_v5 = vmax.f32 %v823_v3, 0.0  ;;  %v1083_v3 = vld [vmem:[#allocation11 + $0xe0] sm:$0xff] }
 0x191   :  { %v1833_v8 = vcombine.low %v1079_v2, %v1083_v3 }
 0x192   :  { %v828_v6 = vpack.c.bf16 %v827_v5, %v826_v4  ;;  %v1825_v4 = vcombine.low %v1071_v62, %v1075_v63  ;;  %v1834_v5 = vcombine.high %v1079_v2, %v1083_v3  ;;  %v1830_v62 = vcombine.high %v1073_v56, %v1077_v57  ;;  %v1082_v2 = vld [vmem:[#allocation11 + $0xd8] sm:$0xff] }
 0x193   :  { %v1086_v3 = vld [vmem:[#allocation11 + $0xf8] sm:$0xff] }
 0x194   :  { %2008 = vmatmul.mubr.bf16.vlgmr.msra.gmra.mrb[8].mxu0 %v828_v6  ;;  %v1087_v6 = vld [vmem:[#allocation11 + $0x100] sm:$0xff] }
 0x195   :  { %1525 = vmatpush1.bf16.msra.mxu0 %v1811_v29  ;;  %1556 = vmatprep.mubr.bf16.mxu0 %v2299_v37 }
 0x196   :  { %1526 = vmatprep.subr.bf16.mxu0 %v1820_v34  ;;  %v1058_v34 = vld [vmem:[#allocation11 + $0x18] sm:$0xff] }
 0x199   :  { %1527 = vmatpush1.bf16.msra.mxu0 %v1819_v25  ;;  %v1062_v25 = vld [vmem:[#allocation11 + $0x38] sm:$0xff] }
 0x19a   :  { %1528 = vmatprep.subr.bf16.mxu0 %v1828_v40  ;;  %v1815_v38 = vcombine.low %v1058_v34, %v1062_v25  ;;  %v1803_v40 = vld [vmem:[%s2521_s7] ss:$0 sm:$0xff] }
 0x19d   :  { %1529 = vmatpush1.bf16.msra.mxu0 %v1827_v41 }
 0x19e   :  { %1530 = vmatprep.subr.bf16.mxu0 %v1836_v44 }
 0x1a1   :  { %1531 = vmatpush1.bf16.msra.mxu0 %v1835_v45 }
 0x1a2   :  { %1532 = vmatprep.subr.bf16.mxu0 %v1844_v48  ;;  %v1069_v48 = vld [vmem:[#allocation11 + $0x70] sm:$0xff] }
 0x1a5   :  { %1533 = vmatpush1.bf16.msra.mxu0 %v1843_v49  ;;  %v1066_v49 = vld [vmem:[#allocation11 + $0x58] sm:$0xff] }
 0x1a6   :  { %1534 = vmatprep.subr.bf16.mxu0 %v1852_v52 }
 0x1a9   :  { %1535 = vmatpush1.bf16.msra.mxu0 %v1851_v53 }
 0x267   :  { %v934_v10 = vpop.f32.mrb[8].mxu0 }
 0x268   :  { %v2476_v11 = vadd.f32 %v1794_v9, %v934_v10  ;;  %v2009_v12 = vpop.f32.mrb[9].mxu0  ;;  %v1095_v10 = vld [vmem:[#allocation11 + $0x140] sm:$0xff] }
 0x269   :  { %v937_v13 = vpop.f32.mrb[10].mxu0  ;;  %v1841_v12 = vcombine.low %v1087_v6, %v1091_v7 }
 0x26a   :  { %v941_v14 = vmul.f32 1.442695, %v2476_v11  ;;  %v2479_v15 = vadd.f32 %v1794_v9, %v937_v13  ;;  %v2010_v16 = vpop.f32.mrb[11].mxu0  ;;  %v1842_v9 = vcombine.high %v1087_v6, %v1091_v7  ;;  %v1840_v7 = vcombine.high %v1082_v2, %v1086_v3 }
 0x26b   :  { %v1107_v16 = vld [vmem:[#allocation11 + $0x1a0] sm:$0xff] }
 0x26c   :  { %2116 = vpow2.f32 %v941_v14  ;;  %v943_v17 = vmul.f32 1.442695, %v2479_v15 }
 0x26e   :  { %2118 = vpow2.f32 %v943_v17  ;;  %v1104_v17 = vld [vmem:[#allocation11 + $0x188] sm:$0xff] }
 0x26f   :  { %v1859_v21 = vcombine.low %v1104_v17, %v1108_v19  ;;  %v1860_v22 = vcombine.high %v1104_v17, %v1108_v19  ;;  %v1101_v17 = vld [vmem:[#allocation11 + $0x170] sm:$0xff]  ;;  %v1102_v19 = vld [vmem:[#allocation11 + $0x178] sm:$0xff] }
 0x271   :  { %1536 = vmatprep.subr.bf16.mxu0 %v1860_v22 }
 0x272   :  { %1537 = vmatpush1.bf16.msra.mxu0 %v1859_v21 }
 0x276   :  { %v2117_v28 = vpop.eup %2116 }
 0x277   :  { %v955_v33 = vmul.f32 %v2117_v28, %v950_v20  ;;  %v1116_v28 = vld [vmem:[#allocation11 + $0x1e8] sm:$0xff] }
 0x278   :  { %v2119_v35 = vpop.eup %2118  ;;  %v1867_v30 = vcombine.low %v1112_v26, %v1116_v28  ;;  %v1868_v31 = vcombine.high %v1112_v26, %v1116_v28  ;;  %v1109_v26 = vld [vmem:[#allocation11 + $0x1b0] sm:$0xff]  ;;  %v1110_v28 = vld [vmem:[#allocation11 + $0x1b8] sm:$0xff] }
 0x279   :  { %959 = vrot.lane.b32.xlu1 %v955_v33, %s2286_s25  ;;  %v956_v39 = vmul.f32 %v2119_v35, %v952_v36  ;;  %v1061_v33 = vld [vmem:[#allocation11 + $0x30] sm:$0xff] }
 0x27a   :  { %1538 = vmatprep.subr.bf16.mxu0 %v1868_v31  ;;  %v1813_v35 = vcombine.low %v1057_v32, %v1061_v33  ;;  %v1814_v36 = vcombine.high %v1057_v32, %v1061_v33  ;;  %v1113_v33 = vld [vmem:[#allocation11 + $0x1d0] sm:$0xff] }
 0x27b   :  { %1539 = vmatpush1.bf16.msra.mxu0 %v1867_v30 }
 0x27d   :  { %961 = vrot.lane.b32.xlu1 %v956_v39, %s2286_s25  ;;  %v1816_v39 = vcombine.high %v1058_v34, %v1062_v25  ;;  %v1117_v34 = vld [vmem:[#allocation11 + $0x1f0] sm:$0xff] }
 0x27f   :  { %1610 = vmatprep.subr.bf16.mxu0 %v1816_v39 }
 0x2eb   :  { %v960_v54 = vpop.permute.xlu1 %959 }
 0x2ec   :  { %v965_v58 = vadd.f32 %v960_v54, %v2476_v11  ;;  %v1099_v11 = vld [vmem:[#allocation11 + $0x160] sm:$0xff]  ;;  %v1822_v54 = vcombine.high %v1065_v47, %v1069_v48 }
 0x2ed   :  { %v1850_v13 = vcombine.high %v1095_v10, %v1099_v11  ;;  %v1849_v14 = vcombine.low %v1095_v10, %v1099_v11  ;;  %v1090_v10 = vld [vmem:[#allocation11 + $0x118] sm:$0xff] }
 0x2ee   :  { %v1094_v11 = vld [vmem:[#allocation11 + $0x138] sm:$0xff] }
 0x2ef   :  { %v962_v55 = vpop.permute.xlu1 %961  ;;  %v1847_v21 = vcombine.low %v1090_v10, %v1094_v11 }
 0x2f0   :  { %v966_v59 = vadd.f32 %v962_v55, %v2479_v15  ;;  %v1103_v15 = vld [vmem:[#allocation11 + $0x180] sm:$0xff]  ;;  %v1824_v55 = vcombine.high %v1066_v49, %v1070_v50 }
 0x2f1   :  { %v1858_v18 = vcombine.high %v1103_v15, %v1107_v16  ;;  %v1857_v20 = vcombine.low %v1103_v15, %v1107_v16  ;;  %v1848_v15 = vcombine.high %v1090_v10, %v1094_v11  ;;  %v1097_v16 = vld [vmem:[#allocation11 + $0x150] sm:$0xff] }
 0x2f2   :  { %v967_v60 = vpack.c.bf16 %v966_v59, %v965_v58  ;;  %v1074_v58 = vld [vmem:[#allocation11 + $0x98] sm:$0xff]  ;;  %v1854_v22 = vcombine.high %v1097_v16, %v1101_v17 }
 0x2f3   :  { %v1078_v59 = vld [vmem:[#allocation11 + $0xb8] sm:$0xff] }
 0x2f4   :  { %2020 = vmatmul.mubr.msk.bf16.vlgmr.msra.gmra.mrb[8].mxu1 %vm1007_vm1, %v967_v60  ;;  %v1821_v60 = vcombine.low %v1065_v47, %v1069_v48  ;;  %v1832_v63 = vcombine.high %v1074_v58, %v1078_v59 }
 0x2f5   :  { %1482 = vmatpush1.bf16.msra.mxu1 %v1809_v24  ;;  %v1115_v24 = vld [vmem:[#allocation11 + $0x1e0] sm:$0xff]  ;;  %1513 = vmatprep.mubr.bf16.mxu1 %v2299_v37 }
 0x2f6   :  { %1483 = vmatprep.subr.bf16.mxu1 %v1818_v61  ;;  %v1866_v27 = vcombine.high %v1111_v23, %v1115_v24  ;;  %v1865_v29 = vcombine.low %v1111_v23, %v1115_v24  ;;  %v1823_v61 = vcombine.low %v1066_v49, %v1070_v50  ;;  %v1105_v24 = vld [vmem:[#allocation11 + $0x190] sm:$0xff] }
 0x2f7   :  { %v1862_v31 = vcombine.high %v1105_v24, %v1109_v26  ;;  %v1861_v25 = vcombine.low %v1105_v24, %v1109_v26 }
 0x2f9   :  { %1484 = vmatpush1.bf16.msra.mxu1 %v1817_v0  ;;  %v1081_v0 = vld [vmem:[#allocation11 + $0xd0] sm:$0xff] }
 0x2fa   :  { %1485 = vmatprep.subr.bf16.mxu1 %v1826_v1  ;;  %v1085_v1 = vld [vmem:[#allocation11 + $0xf0] sm:$0xff] }
 0x2fb   :  { %v1838_v6 = vcombine.high %v1081_v0, %v1085_v1 }
 0x2fd   :  { %1486 = vmatpush1.bf16.msra.mxu1 %v1825_v4  ;;  %v1829_v4 = vcombine.low %v1073_v56, %v1077_v57 }
 0x2fe   :  { %1487 = vmatprep.subr.bf16.mxu1 %v1834_v5  ;;  %v1831_v5 = vcombine.low %v1074_v58, %v1078_v59 }
 0x301   :  { %1488 = vmatpush1.bf16.msra.mxu1 %v1833_v8  ;;  %v1089_v8 = vld [vmem:[#allocation11 + $0x110] sm:$0xff] }
 0x302   :  { %1489 = vmatprep.subr.bf16.mxu1 %v1842_v9  ;;  %v1093_v9 = vld [vmem:[#allocation11 + $0x130] sm:$0xff] }
 0x305   :  { %1490 = vmatpush1.bf16.msra.mxu1 %v1841_v12  ;;  %v1837_v12 = vcombine.low %v1081_v0, %v1085_v1 }
 0x306   :  { %1491 = vmatprep.subr.bf16.mxu1 %v1850_v13  ;;  %v1839_v13 = vcombine.low %v1082_v2, %v1086_v3 }
 0x309   :  { %1492 = vmatpush1.bf16.msra.mxu1 %v1849_v14  ;;  %v1846_v14 = vcombine.high %v1089_v8, %v1093_v9 }
 0x30a   :  { %1493 = vmatprep.subr.bf16.mxu1 %v1858_v18  ;;  %v1098_v18 = vld [vmem:[#allocation11 + $0x158] sm:$0xff] }
 0x30b   :  { %v1856_v23 = vcombine.high %v1098_v18, %v1102_v19  ;;  %v1855_v30 = vcombine.low %v1098_v18, %v1102_v19 }
 0x30d   :  { %1494 = vmatpush1.bf16.msra.mxu1 %v1857_v20  ;;  %v1845_v20 = vcombine.low %v1089_v8, %v1093_v9 }
 0x30e   :  { %1495 = vmatprep.subr.bf16.mxu1 %v1866_v27  ;;  %v1106_v27 = vld [vmem:[#allocation11 + $0x198] sm:$0xff] }
 0x30f   :  { %v1864_v32 = vcombine.high %v1106_v27, %v1110_v28 }
 0x311   :  { %1496 = vmatpush1.bf16.msra.mxu1 %v1865_v29  ;;  %v1853_v29 = vcombine.low %v1097_v16, %v1101_v17 }
 0x312   :  { %1567 = vmatprep.subr.bf16.mxu1 %v1814_v36  ;;  %v1118_v36 = vld [vmem:[#allocation11 + $0x1f8] sm:$0xff] }
 0x3c7   :  { %v1045_v41 = vpop.f32.mrb[8].mxu1 }
 0x3c8   :  { %v1046_v42 = vadd.f32 %v1803_v40, %v1045_v41  ;;  %v2021_v43 = vpop.f32.mrb[9].mxu1 }
 0x3c9   :  { %v1048_v44 = vpop.f32.mrb[10].mxu1 }
 0x3ca   :  { %v1049_v45 = vadd.f32 %v1803_v40, %v1048_v44  ;;  %v2022_v46 = vpop.f32.mrb[11].mxu1  ;;  %v1052_v51 = vmax.f32 %v1046_v42, 0.0  ;;  %v1869_v40 = vcombine.low %v1113_v33, %v1117_v34  ;;  %v1121_v42 = vlaneseq }
 0x3cb   :  { %v1119_v46 = vld [vmem:[%s2523_s9] sm:$0xff] }
 0x3cc   :  { %v1053_v52 = vmax.f32 %v1049_v45, 0.0  ;;  %v1122_v43 = vshrl.u32 %v1121_v42, 7 }
 0x3ce   :  { %v2490_v53 = vpack.c.bf16 %v1053_v52, %v1052_v51  ;;  %v1123_v44 = vsub.s32 0, %v1122_v43  ;;  %v1131_v45 = vsub.s32 2, %v1122_v43  ;;  %v1127_v47 = vsub.s32 1, %v1122_v43 }
 0x3cf   :  { %v1135_v48 = vsub.s32 3, %v1122_v43  ;;  %v1139_v9 = vsub.s32 4, %v1122_v43  ;;  %v1147_v10 = vsub.s32 6, %v1122_v43  ;;  %v1143_v11 = vsub.s32 5, %v1122_v43 }
 0x3d0   :  { %1514 = vmatmul.mubr.bf16.vlgmr.msra.gmra.mrb[12].mxu1 %v2490_v53  ;;  %1557 = vmatmul.mubr.bf16.vlgmr.msra.gmra.mrb[12].mxu0 %v2490_v53  ;;  %v1124_v49 = vrot.slane %v1119_v46, %v1123_v44  ;;  %v1132_v50 = vrot.slane %v1119_v46, %v1131_v45  ;;  %v1128_v51 = vrot.slane %v1119_v46, %v1127_v47 }
 0x3d1   :  { %1568 = vmatpush1.bf16.msra.mxu1 %v1813_v35  ;;  %1611 = vmatpush1.bf16.msra.mxu0 %v1815_v38  ;;  %v1114_v35 = vld [vmem:[#allocation11 + $0x1d8] sm:$0xff]  ;;  %v1870_v38 = vcombine.high %v1113_v33, %v1117_v34  ;;  %v1136_v52 = vrot.slane %v1119_v46, %v1135_v48 }
 0x3d2   :  { %1569 = vmatprep.subr.bf16.mxu1 %v1822_v54  ;;  %1612 = vmatprep.subr.bf16.mxu0 %v1824_v55  ;;  %v1872_v39 = vcombine.high %v1114_v35, %v1118_v36  ;;  %v1871_v41 = vcombine.low %v1114_v35, %v1118_v36 }
 0x3d3   :  { %1599 = vmatprep.mubr.bf16.mxu1 %v2299_v37  ;;  %1642 = vmatprep.mubr.bf16.mxu0 %v2299_v37  ;;  %v1863_v37 = vcombine.low %v1106_v27, %v1110_v28 }
 0x3d5   :  { %1570 = vmatpush1.bf16.msra.mxu1 %v1821_v60  ;;  %1613 = vmatpush1.bf16.msra.mxu0 %v1823_v61 }
 0x3d6   :  { %1571 = vmatprep.subr.bf16.mxu1 %v1830_v62  ;;  %1614 = vmatprep.subr.bf16.mxu0 %v1832_v63 }
 0x3d9   :  { %1572 = vmatpush1.bf16.msra.mxu1 %v1829_v4  ;;  %1615 = vmatpush1.bf16.msra.mxu0 %v1831_v5 }
 0x3da   :  { %1573 = vmatprep.subr.bf16.mxu1 %v1838_v6  ;;  %1616 = vmatprep.subr.bf16.mxu0 %v1840_v7 }
 0x3dd   :  { %1574 = vmatpush1.bf16.msra.mxu1 %v1837_v12  ;;  %1617 = vmatpush1.bf16.msra.mxu0 %v1839_v13  ;;  %v1151_v12 = vsub.s32 7, %v1122_v43  ;;  %v1140_v13 = vrot.slane %v1119_v46, %v1139_v9 }
 0x3de   :  { %1575 = vmatprep.subr.bf16.mxu1 %v1846_v14  ;;  %1618 = vmatprep.subr.bf16.mxu0 %v1848_v15  ;;  %v1148_v14 = vrot.slane %v1119_v46, %v1147_v10  ;;  %v1144_v15 = vrot.slane %v1119_v46, %v1143_v11 }
 0x3df   :  { %v1152_v16 = vrot.slane %v1119_v46, %v1151_v12 }
 0x3e1   :  { %1576 = vmatpush1.bf16.msra.mxu1 %v1845_v20  ;;  %1619 = vmatpush1.bf16.msra.mxu0 %v1847_v21 }
 0x3e2   :  { %1577 = vmatprep.subr.bf16.mxu1 %v1854_v22  ;;  %1620 = vmatprep.subr.bf16.mxu0 %v1856_v23 }
 0x3e5   :  { %1578 = vmatpush1.bf16.msra.mxu1 %v1853_v29  ;;  %1621 = vmatpush1.bf16.msra.mxu0 %v1855_v30 }
 0x3e6   :  { %1579 = vmatprep.subr.bf16.mxu1 %v1862_v31  ;;  %1622 = vmatprep.subr.bf16.mxu0 %v1864_v32 }
 0x3e9   :  { %1580 = vmatpush1.bf16.msra.mxu1 %v1861_v25  ;;  %1623 = vmatpush1.bf16.msra.mxu0 %v1863_v37 }
 0x3ea   :  { %1581 = vmatprep.subr.bf16.mxu1 %v1870_v38  ;;  %1624 = vmatprep.subr.bf16.mxu0 %v1872_v39 }
 0x3ed   :  { %1582 = vmatpush1.bf16.msra.mxu1 %v1869_v40  ;;  %1625 = vmatpush1.bf16.msra.mxu0 %v1871_v41 }
 0x3f0   :  { %1600 = vmatmul.mubr.bf16.vlgmr.msra.gmra.mrb[16].mxu1 %v2490_v53  ;;  %1643 = vmatmul.mubr.bf16.vlgmr.msra.gmra.mrb[16].mxu0 %v2490_v53 }
 0x4a3   :  { %v1515_v54 = vpop.f32.mrb[12].mxu1  ;;  %v1558_v55 = vpop.f32.mrb[12].mxu0 }
 0x4a4   :  { %v1516_v56 = vadd.f32 %v1515_v54, %v1124_v49  ;;  %v1559_v57 = vadd.f32 %v1558_v55, %v1132_v50  ;;  %v1517_v58 = vpop.f32.mrb[13].mxu1  ;;  %v1560_v53 = vpop.f32.mrb[13].mxu0 }
 0x4a5   :  { %v1518_v59 = vadd.f32 %v1517_v58, %v1128_v51  ;;  %v1561_v60 = vadd.f32 %v1560_v53, %v1136_v52  ;;  %v1519_v61 = vpop.f32.mrb[14].mxu1  ;;  %v1562_v62 = vpop.f32.mrb[14].mxu0 }
 0x4a6   :  { %v1520_v63 = vadd.f32 %v1519_v61, %v1124_v49  ;;  %v1563_v0 = vadd.f32 %v1562_v62, %v1132_v50  ;;  %v1521_v1 = vpop.f32.mrb[15].mxu1  ;;  %v1564_v2 = vpop.f32.mrb[15].mxu0 }
 0x4a7   :  { %v1881_v3 = vpack.c.bf16 %v1518_v59, %v1516_v56  ;;  %v1882_v4 = vpack.c.bf16 %v1561_v60, %v1559_v57  ;;  %v1522_v5 = vadd.f32 %v1521_v1, %v1128_v51  ;;  %v1565_v6 = vadd.f32 %v1564_v2, %v1136_v52 }
 0x4a9   :  { %1701 = vst [vmem:[#allocation13] sm:$0xff] %v1881_v3  ;;  %1702 = vst [vmem:[#allocation13 + $0x8] sm:$0xff] %v1882_v4  ;;  %v1885_v7 = vpack.c.bf16 %v1522_v5, %v1520_v63  ;;  %v1886_v8 = vpack.c.bf16 %v1565_v6, %v1563_v0 }
 0x4ab   :  { %1705 = vst [vmem:[#allocation13 + $0x20] sm:$0xff] %v1885_v7  ;;  %1706 = vst [vmem:[#allocation13 + $0x28] sm:$0xff] %v1886_v8 }
 0x4c3   :  { %v1601_v17 = vpop.f32.mrb[16].mxu1  ;;  %v1644_v18 = vpop.f32.mrb[16].mxu0 }
 0x4c4   :  { %v1602_v19 = vadd.f32 %v1601_v17, %v1140_v13  ;;  %v1645_v20 = vadd.f32 %v1644_v18, %v1148_v14  ;;  %v1603_v21 = vpop.f32.mrb[17].mxu1  ;;  %v1646_v22 = vpop.f32.mrb[17].mxu0 }
 0x4c5   :  { %v1604_v23 = vadd.f32 %v1603_v21, %v1144_v15  ;;  %v1647_v24 = vadd.f32 %v1646_v22, %v1152_v16  ;;  %v1605_v26 = vpop.f32.mrb[18].mxu1  ;;  %v1648_v27 = vpop.f32.mrb[18].mxu0 }
 0x4c6   :  { %v1606_v28 = vadd.f32 %v1605_v26, %v1140_v13  ;;  %v1649_v29 = vadd.f32 %v1648_v27, %v1148_v14  ;;  %v1607_v30 = vpop.f32.mrb[19].mxu1  ;;  %v1650_v31 = vpop.f32.mrb[19].mxu0 }
 0x4c7   :  { %v1883_v32 = vpack.c.bf16 %v1604_v23, %v1602_v19  ;;  %v1884_v33 = vpack.c.bf16 %v1647_v24, %v1645_v20  ;;  %v1608_v34 = vadd.f32 %v1607_v30, %v1144_v15  ;;  %v1651_v35 = vadd.f32 %v1650_v31, %v1152_v16 }
 0x4c9   :  { %1703 = vst [vmem:[#allocation13 + $0x10] sm:$0xff] %v1883_v32  ;;  %1704 = vst [vmem:[#allocation13 + $0x18] sm:$0xff] %v1884_v33  ;;  %v1887_v36 = vpack.c.bf16 %v1608_v34, %v1606_v28  ;;  %v1888_v25 = vpack.c.bf16 %v1651_v35, %v1649_v29 }
 0x4cb   :  { %1707 = vst [vmem:[#allocation13 + $0x30] sm:$0xff] %v1887_v36  ;;  %1708 = vst [vmem:[#allocation13 + $0x38] sm:$0xff] %v1888_v25 }
 0x4cc   :  { %1713 = vsyncadd [#allocation4], 512  ;;  %s2300_s9 = smov [#allocation13]  }
 0x4cd   :  { %s1714_s13 = sshll.u32 %s2300_s9, 4  ;;  %s1715_s13 = int_to_ptr.vmem [resolvable:$true] %s1714_s13 }
 0x4ce   :  { %s2252_s15 = scalar_lea.vmem %s1715_s13, 512  ;;  %s2256_s1 = scalar_lea.vmem %s1715_s13, 1024 }
 0x4cf   :  { %p2253_p6 = scmp.ne.s32.totalorder %s1715_s13, %s2252_s15  ;;  %p2257_p7 = scmp.lt.s32.totalorder %s1715_s13, %s1715_s13 }
 0x4d0   :  { %p2258_p8 = scmp.lt.s32.totalorder %s2256_s1, %s2252_s15 }
 0x4d2   :  { %p2259_p9 = por %p2258_p8, %p2257_p7 }
 0x4d4   :  { %p2260_p10 = pnand %p2259_p9, %p2253_p6 }
 0x4d6   :  { %2263 = shalt.err (!%p2260_p10)
}
 0x4d7   :  { %s2264_s18 = scalar_lea.hbm %s2524_s10, 512 }
 0x4d8   :  { %p2265_p11 = scmp.ne.s32.totalorder %s2524_s10, %s2264_s18  ;;  %p2268_p12 = scmp.lt.u32.totalorder %s2264_s18, %s2524_s10 }
 0x4da   :  { %p2270_p13 = pnand %p2268_p12, %p2265_p11 }
 0x4dc   :  { %2273 = shalt.err (!%p2270_p13)
}
 0x4dd   :  { %1720 = dma.vmem_to_hbm [thread:$0]  %s1715_s13, 512, %s2524_s10, [#allocation4], %s2295_s6, %s2295_s6, %s2296_s29  }
 0x4de   :  { %2282 = dma.done.wait [#allocation4], 1024  }
 0x4df   :  { %2283 = vsyncadd [#allocation4], 4294966272 }
 0x4e0   :  { %1724 = vsyncpa [#allocation3], 1 }
 0x4e1   :  { %1725 = vsyncpa [#allocation6], 1 }
 0x4e2   :  { %1726 = vsyncpa [#allocation9], 1 }
 0x4e3   :  { %1727 = vsyncpa [#allocation12], 1 }
 0x4e4   :  { %1728 = vsyncpa [#allocation4], 1 }

</bundles_post_ra>
